<compile_context>
chip_gen: v5e
topology: v5e:2x2
jax: 0.10.0
libtpu: 0.0.40
codegen_flags: <defaults>
</compile_context>

<pallas_src>
import jax
import jax.numpy as jnp
from jax import lax
from jax.experimental import pallas as pl
from jax.experimental.pallas import tpu as pltpu


def _reg_weighted_l1_kernel(ind_ref,     # VMEM (1, 1, K) int32
                            mask_ref,    # VMEM (1, C, K) input dtype
                            target_ref,  # VMEM (1, C, K) input dtype
                            feat_ref,    # VMEM (1, C, HW) one batch slab
                            out_ref):    # VMEM (1, 1, 1) f32 per-batch partial
    HW = feat_ref.shape[2]
    K = ind_ref.shape[2]

    idx = ind_ref[0]                                            # (1, K) int32
    hw_ids = lax.broadcasted_iota(jnp.int32, (HW, K), 0)        # (HW, K)
    # Exactly one 1.0 per column -> dot below is an exact gather.
    onehot = (hw_ids == idx).astype(feat_ref.dtype)             # (HW, K)

    # In-VMEM gather on the MXU: pred[c, k] = feat[c, ind[k]].
    pred = jnp.dot(feat_ref[0], onehot,
                   preferred_element_type=jnp.float32)          # (C, K) f32

    m = mask_ref[0].astype(jnp.float32)                         # (C, K)
    t = target_ref[0].astype(jnp.float32)                       # (C, K)

    diff = jnp.abs(pred * m - t * m)                            # faithful form
    out_ref[...] = jnp.sum(diff, keepdims=True).reshape(1, 1, 1)


def reg_weighted_l1_loss(output, mask, ind, target):
    """output: (B, C, H, W); mask/target: (B, K, C); ind: (B, K) int."""
    B, C, H, W = output.shape
    K = ind.shape[1]
    HW = H * W

    # "transpose_and_gather" on NCHW == gathering columns of the (B, C, H*W)
    # view; the reshape is free (contiguous) — no full-map transpose in HBM.
    feat = output.reshape(B, C, HW)
    # Guard bad indices (reference behavior for OOB ind is undefined).
    ind_i = jnp.clip(ind.astype(jnp.int32), 0, HW - 1).reshape(B, 1, K)
    # mask/target are tiny (B*K*C): transpose to (B, C, K) so K sits on the
    # 128-lane axis; keep original dtype (upcast happens in-kernel).
    mask_t = jnp.transpose(mask, (0, 2, 1))
    target_t = jnp.transpose(target, (0, 2, 1))

    partial = pl.pallas_call(
        _reg_weighted_l1_kernel,
        out_shape=jax.ShapeDtypeStruct((B, 1, 1), jnp.float32),
        grid=(B,),
        in_specs=[
            pl.BlockSpec((1, 1, K), lambda b: (b, 0, 0)),    # ind
            pl.BlockSpec((1, C, K), lambda b: (b, 0, 0)),    # mask
            pl.BlockSpec((1, C, K), lambda b: (b, 0, 0)),    # target
            pl.BlockSpec((1, C, HW), lambda b: (b, 0, 0)),   # feature slab
        ],
        out_specs=pl.BlockSpec((1, 1, 1), lambda b: (b, 0, 0)),
        compiler_params=pltpu.CompilerParams(
            dimension_semantics=("parallel",)),
    )(ind_i, mask_t, target_t, feat)

    # Tiny epilogue in XLA: final reduce of B partials, mask normalizer, divide.
    num = jnp.sum(partial)
    den = jnp.sum(mask.astype(jnp.float32)) + 1e-4
    return num / den


def _reference_loss(output, mask, ind, target):
    B, C, H, W = output.shape
    feat = jnp.transpose(output, (0, 2, 3, 1)).reshape(B, H * W, C)
    pred = jnp.take_along_axis(feat, ind[:, :, None].astype(jnp.int32), axis=1)
    m = mask.astype(jnp.float32)
    t = target.astype(jnp.float32)
    num = jnp.sum(jnp.abs(pred * m - t * m))
    return num / (jnp.sum(m) + 1e-4)


if __name__ == "__main__":
    B, C, H, W, K = 2, 4, 16, 16, 8

    key = jax.random.PRNGKey(0)
    k1, k2, k3, k4 = jax.random.split(key, 4)

    output = jax.random.normal(k1, (B, C, H, W), dtype=jnp.float32)
    ind = jax.random.randint(k2, (B, K), 0, H * W, dtype=jnp.int32)
    target = jax.random.normal(k3, (B, K, C), dtype=jnp.float32)
    mask = (jax.random.uniform(k4, (B, K, C)) > 0.3).astype(jnp.float32)

    loss = reg_weighted_l1_loss(output, mask, ind, target)
    loss = jax.block_until_ready(loss)

    ref = _reference_loss(output, mask, ind, target)
    assert jnp.allclose(loss, ref, rtol=1e-5, atol=1e-5), (loss, ref)

    print("KERNEL_OK")
</pallas_src>

<mosaic_0001>
module attributes {stable_mosaic.version = 11 : i64} {
  func.func @_reg_weighted_l1_kernel(%arg0: i32, %arg1: memref<1x1x8xi32, #tpu.memory_space<vmem>>, %arg2: memref<1x4x8xf32, #tpu.memory_space<vmem>>, %arg3: memref<1x4x8xf32, #tpu.memory_space<vmem>>, %arg4: memref<1x4x256xf32, #tpu.memory_space<vmem>>, %arg5: memref<1x1x1xf32, #tpu.memory_space<vmem>>) attributes {dimension_semantics = [#tpu.dimension_semantics<parallel>], iteration_bounds = array<i64: 2>, scalar_prefetch = 0 : i64, scratch_operands = 0 : i64, tpu.core_type = #tpu.core_type<tc>, window_params = [{transform_indices = @transform_0, window_bounds = array<i64: 1, 1, 8>}, {transform_indices = @transform_1, window_bounds = array<i64: 1, 4, 8>}, {transform_indices = @transform_2, window_bounds = array<i64: 1, 4, 8>}, {transform_indices = @transform_3, window_bounds = array<i64: 1, 4, 256>}, {transform_indices = @transform_4, window_bounds = array<i64: 1, 1, 1>}]} {
    %c0 = arith.constant 0 : index
    %c0_0 = arith.constant 0 : index
    %c0_1 = arith.constant 0 : index
    %0 = vector.load %arg1[%c0, %c0_0, %c0_1] : memref<1x1x8xi32, #tpu.memory_space<vmem>>, vector<1x1x8xi32>
    %1 = vector.shape_cast %0 : vector<1x1x8xi32> to vector<1x8xi32>
    %2 = tpu.iota {dimensions = array<i32: 0>} : vector<256x8xi32>
    %3 = vector.broadcast %1 : vector<1x8xi32> to vector<256x8xi32>
    %4 = arith.cmpi eq, %2, %3 : vector<256x8xi32>
    %5 = arith.extui %4 : vector<256x8xi1> to vector<256x8xi32>
    %6 = arith.sitofp %5 : vector<256x8xi32> to vector<256x8xf32>
    %c0_2 = arith.constant 0 : index
    %c0_3 = arith.constant 0 : index
    %c0_4 = arith.constant 0 : index
    %7 = vector.load %arg4[%c0_2, %c0_3, %c0_4] : memref<1x4x256xf32, #tpu.memory_space<vmem>>, vector<1x4x256xf32>
    %8 = vector.shape_cast %7 : vector<1x4x256xf32> to vector<4x256xf32>
    %cst = arith.constant dense<0.000000e+00> : vector<4x8xf32>
    %9 = tpu.matmul %8, %6, %cst {dimension_numbers = #tpu.dot_dimension_numbers<[1], [0], [0], [1], [0, 0, 1, 1], [], []>} : vector<4x256xf32>, vector<256x8xf32>, vector<4x8xf32> -> vector<4x8xf32>
    %c0_5 = arith.constant 0 : index
    %c0_6 = arith.constant 0 : index
    %c0_7 = arith.constant 0 : index
    %10 = vector.load %arg2[%c0_5, %c0_6, %c0_7] : memref<1x4x8xf32, #tpu.memory_space<vmem>>, vector<1x4x8xf32>
    %11 = vector.shape_cast %10 : vector<1x4x8xf32> to vector<4x8xf32>
    %c0_8 = arith.constant 0 : index
    %c0_9 = arith.constant 0 : index
    %c0_10 = arith.constant 0 : index
    %12 = vector.load %arg3[%c0_8, %c0_9, %c0_10] : memref<1x4x8xf32, #tpu.memory_space<vmem>>, vector<1x4x8xf32>
    %13 = vector.shape_cast %12 : vector<1x4x8xf32> to vector<4x8xf32>
    %14 = arith.mulf %9, %11 : vector<4x8xf32>
    %15 = arith.mulf %13, %11 : vector<4x8xf32>
    %16 = arith.subf %14, %15 : vector<4x8xf32>
    %17 = math.absf %16 : vector<4x8xf32>
    %18 = vector.shape_cast %17 : vector<4x8xf32> to vector<1x4x8xf32>
    %cst_11 = arith.constant dense<0.000000e+00> : vector<1xf32>
    %19 = vector.multi_reduction <add>, %18, %cst_11 [1, 2] : vector<1x4x8xf32> to vector<1xf32>
    %20 = vector.shape_cast %19 : vector<1xf32> to vector<1x1x1xf32>
    %21 = vector.extract %20[0, 0, 0] : f32 from vector<1x1x1xf32>
    %22 = vector.broadcast %21 : f32 to vector<1x1xf32>
    %23 = vector.shape_cast %22 : vector<1x1xf32> to vector<1x1x1xf32>
    %c0_12 = arith.constant 0 : index
    %c0_13 = arith.constant 0 : index
    %c0_14 = arith.constant 0 : index
    %24 = vector.load %arg5[%c0_12, %c0_13, %c0_14] : memref<1x1x1xf32, #tpu.memory_space<vmem>>, vector<1x1x1xf32>
    tpu.vector_store %arg5[%c0_12, %c0_13, %c0_14], %23 {strides = array<i32>} : memref<1x1x1xf32, #tpu.memory_space<vmem>>, vector<1x1x1xf32>,
    return
  }
  func.func @transform_0(%arg0: i32) -> (i32, i32, i32) {
    %c0_i32 = arith.constant 0 : i32
    %c0_i32_0 = arith.constant 0 : i32
    %c0_i32_1 = arith.constant 0 : i32
    return %arg0, %c0_i32, %c0_i32_0 : i32, i32, i32
  }
  func.func @transform_1(%arg0: i32) -> (i32, i32, i32) {
    %c0_i32 = arith.constant 0 : i32
    %c0_i32_0 = arith.constant 0 : i32
    %c0_i32_1 = arith.constant 0 : i32
    return %arg0, %c0_i32, %c0_i32_0 : i32, i32, i32
  }
  func.func @transform_2(%arg0: i32) -> (i32, i32, i32) {
    %c0_i32 = arith.constant 0 : i32
    %c0_i32_0 = arith.constant 0 : i32
    %c0_i32_1 = arith.constant 0 : i32
    return %arg0, %c0_i32, %c0_i32_0 : i32, i32, i32
  }
  func.func @transform_3(%arg0: i32) -> (i32, i32, i32) {
    %c0_i32 = arith.constant 0 : i32
    %c0_i32_0 = arith.constant 0 : i32
    %c0_i32_1 = arith.constant 0 : i32
    return %arg0, %c0_i32, %c0_i32_0 : i32, i32, i32
  }
  func.func @transform_4(%arg0: i32) -> (i32, i32, i32) {
    %c0_i32 = arith.constant 0 : i32
    %c0_i32_0 = arith.constant 0 : i32
    %c0_i32_1 = arith.constant 0 : i32
    return %arg0, %c0_i32, %c0_i32_0 : i32, i32, i32
  }
}

</mosaic_0001>

<bundles_post_ra>
// kernel: tpu_custom_call.1
= control target key start
LH: loop header
LB: loop body
LE: loop exit
PB: predicated region body
PF: predicated region fallthrough
CT: control target
= control target key end

     0   :  { %9 = vsyncpa [#allocation3], 0  ;;  %s1243_s0 = inlined_call_operand.hbm [shape: s32[2,1,8], index: 0, kind: input, shape index: {}]   ;;  %s1244_s1 = inlined_call_operand.hbm [shape: f32[2,4,8], index: 1, kind: input, shape index: {}]   ;;  %s1245_s2 = inlined_call_operand.hbm [shape: f32[2,4,8], index: 2, kind: input, shape index: {}]   ;;  %s1246_s3 = inlined_call_operand.hbm [shape: f32[2,4,256], index: 3, kind: input, shape index: {}]   ;;  %s1247_s4 = inlined_call_operand.vmem [shape: f32[2,1,1], index: 4, kind: output, shape index: {}]  }
   0x1   :  { %11 = vsyncpa [#allocation3 + $0x1], 0 }
   0x2   :  { %12 = vsyncpa [#allocation5], 0 }
   0x3   :  { %14 = vsyncpa [#allocation5 + $0x1], 0 }
   0x4   :  { %15 = vsyncpa [#allocation8], 0 }
   0x5   :  { %17 = vsyncpa [#allocation8 + $0x1], 0  ;;  %s972_s15 = smov 0   ;;  %s974_s16 = smov 0  }
   0x6   :  { %s976_s17 = smov 0   ;;  %s978_s18 = smov 0  }
   0x7 LB: > { %s991_s19 = sadd.s32 4294967295, %s944_s18   ;;  %s994_s20 = sadd.s32 1, %s944_s18   ;;  %s944_s18 = sphi %s978_s18, %s1254_s18   ;;  %s940_s17 = sphi %s976_s17, %s1253_s17   ;;  %s936_s16 = sphi %s974_s16, %s1252_s16   ;;  %s932_s15 = sphi %s972_s15, %s1251_s15  }
   0x8   : > { %s27_s21 = ssub.s32 %s944_s18, %s994_s20  ;;  %s30_s22 = sadd.s32 1, %s940_s17 }
   0x9   : > { %p28_p0 = scmp.eq.s32.totalorder %s27_s21, 0  ;;  %p37_p1 = scmp.ne.s32.totalorder %s940_s17, %s936_s16 }
   0xa   : > { %p38_p2 = scmp.eq.s32.totalorder %s944_s18, 0  ;;  %p43_p3 = scmp.ne.s32.totalorder %s936_s16, %s932_s15 }
   0xb   : > { %s1004_s23 = scalar_select %p28_p0, %s940_s17, %s30_s22  }
   0xc   : > { %p39_p4 = por %p38_p2, %p37_p1  ;;  %p44_p5 = scmp.eq.s32.totalorder %s991_s19, 0 }
   0xd   : > { %p747_p6 = scmp.lt.s32.totalorder %s944_s18, 2  ;;  %s1013_s25 = sand.u32 1, %s940_s17  }
   0xe   : > { %p1008_p7 = por %p44_p5, %p43_p3  ;;  %s188_s27 = sand.u32 1, %s944_s18  }
   0xf   : > { %p1015_p8 = pnand %p747_p6, %p39_p4  ;;  %s646_s28 = sshll.u32 %s1013_s25, 2 }
  0x10   : > { %s647_s29 = sshll.u32 %s944_s18, 2  ;;  %s192_s30 = scalar_lea.vmem [#allocation4], %s646_s28 }
  0x11   : > { %s200_s5 = sshll.u32 %s192_s30, 4  ;;  %s196_s8 = scalar_lea.hbm %s1244_s1, %s647_s29  ;;  %s201_s5 = int_to_ptr.vmem [resolvable:$true] %s200_s5 }
  0x12   : > { %s198_s9 = sshll.u32 %s196_s8, 4  ;;  %s1030_s12 = scalar_lea.hbm %s1245_s2, %s647_s29  ;;  %s199_s9 = int_to_ptr.hbm [resolvable:$true] %s198_s9 }
  0x13   : > { %s1032_s13 = scalar_lea.sflag [#allocation5], %s188_s27  ;;  %s782_s14 = sshra.s32 %s199_s9, 4  ;;  %s783_s14 = int_to_ptr.hbm [resolvable:$true] %s782_s14 }
  0x14   : > { %s784_s15 = scalar_lea.hbm %s783_s14, 4  ;;  %p786_p10 = pneg %p1015_p8 }
  0x15   : > { %p785_p9 = scmp.ne.s32.totalorder %s783_s14, %s784_s15  ;;  %s789_s30 = scalar_lea.hbm %s1244_s1, 8 }
  0x16   : > { %p790_p13 = scmp.lt.s32.totalorder %s783_s14, %s1244_s1  ;;  %p791_p0 = scmp.lt.s32.totalorder %s789_s30, %s784_s15 }
  0x17   : > { %p787_p11 = pnand %p786_p10, %p785_p9 }
  0x18   : > { %p792_p1 = por %p791_p0, %p790_p13 }
  0x19   : > { %p788_p12 = pneg %p787_p11 }
  0x1b   : > { %p793_p2 = pnand %p792_p1, %p788_p12 }
  0x1d   : > { %796 = shalt.err (!%p793_p2)
}
  0x1e   : > { %740 = dma.hbm_to_vmem [thread:$0]  (!%p1015_p8), %s199_s9, 64, %s201_s5, %s1032_s13  }
  0x1f   : > { %p653_p3 = scmp.ge.s32.totalorder %s944_s18, 1  ;;  %p244_p4 = scmp.lt.s32.totalorder %s944_s18, 3 }
  0x20   : > { %s177_s10 = scalar_lea.hbm %s1243_s0, %s944_s18  ;;  %s174_s14 = scalar_lea.vmem [#allocation2], %s1013_s25 }
  0x21   : > { %p1050_p5 = pnand %p653_p3, %p244_p4  ;;  %s179_s11 = sshll.u32 %s177_s10, 4  ;;  %s180_s11 = int_to_ptr.hbm [resolvable:$true] %s179_s11 }
  0x22   : > { %s181_s15 = sshll.u32 %s174_s14, 4  ;;  %s172_s21 = scalar_lea.sflag [#allocation3], %s1013_s25  ;;  %s182_s15 = int_to_ptr.vmem [resolvable:$true] %s181_s15 }
  0x23   : > { %s812_s22 = sshra.s32 %s180_s11, 4  ;;  %s819_s6 = scalar_lea.hbm %s1243_s0, 2  ;;  %s813_s22 = int_to_ptr.hbm [resolvable:$true] %s812_s22 }
  0x24   : > { %s814_s30 = scalar_lea.hbm %s813_s22, 1  ;;  %p820_p12 = scmp.lt.s32.totalorder %s813_s22, %s1243_s0 }
  0x25   : > { %p815_p6 = scmp.ne.s32.totalorder %s813_s22, %s814_s30  ;;  %p821_p13 = scmp.lt.s32.totalorder %s819_s6, %s814_s30 }
  0x27   : > { %p817_p9 = pnand %p815_p6, %p786_p10  ;;  %p822_p0 = por %p821_p13, %p820_p12 }
  0x29   : > { %p818_p11 = pneg %p817_p9 }
  0x2b   : > { %p823_p1 = pnand %p822_p0, %p818_p11 }
  0x2d   : > { %826 = shalt.err (!%p823_p1)
}
  0x2e   : > { %737 = dma.hbm_to_vmem [thread:$0]  (!%p1015_p8), %s180_s11, 16, %s182_s15, %s172_s21  }
  0x2f   : > { %s217_s8 = sshll.u32 %s1030_s12, 4  ;;  %s211_s10 = scalar_lea.vmem [#allocation6], %s646_s28  ;;  %s218_s8 = int_to_ptr.hbm [resolvable:$true] %s217_s8 }
  0x30   : > { %s219_s14 = sshll.u32 %s211_s10, 4  ;;  %s842_s5 = sshra.s32 %s218_s8, 4  ;;  %s220_s14 = int_to_ptr.vmem [resolvable:$true] %s219_s14  ;;  %s843_s5 = int_to_ptr.hbm [resolvable:$true] %s842_s5 }
  0x31   : > { %s844_s9 = scalar_lea.hbm %s843_s5, 4  ;;  %s849_s6 = scalar_lea.hbm %s1245_s2, 8 }
  0x32   : > { %p845_p2 = scmp.ne.s32.totalorder %s843_s5, %s844_s9  ;;  %p850_p6 = scmp.lt.s32.totalorder %s843_s5, %s1245_s2 }
  0x33   : > { %p851_p9 = scmp.lt.s32.totalorder %s849_s6, %s844_s9 }
  0x34   : > { %p847_p3 = pnand %p845_p2, %p786_p10 }
  0x35   : > { %p852_p11 = por %p851_p9, %p850_p6 }
  0x36   : > { %p848_p4 = pneg %p847_p3 }
  0x38   : > { %p853_p12 = pnand %p852_p11, %p848_p4 }
  0x3a   : > { %856 = shalt.err (!%p853_p12)
}
  0x3b   : > { %743 = dma.hbm_to_vmem [thread:$0]  (!%p1015_p8), %s218_s8, 64, %s220_s14, %s1032_s13  }
  0x3c   : > { %s650_s28 = sshll.u32 %s1013_s25, 3  ;;  %s723_s12 = sshll.u32 %s944_s18, 3 }
  0x3d   : > { %s235_s29 = scalar_lea.hbm %s1246_s3, %s723_s12  ;;  %s230_s10 = scalar_lea.vmem [#allocation7], %s650_s28 }
  0x3e   : > { %s239_s5 = sshll.u32 %s230_s10, 4  ;;  %s237_s9 = sshll.u32 %s235_s29, 4  ;;  %s240_s5 = int_to_ptr.vmem [resolvable:$true] %s239_s5  ;;  %s238_s9 = int_to_ptr.hbm [resolvable:$true] %s237_s9 }
  0x3f   : > { %s227_s22 = scalar_lea.sflag [#allocation8], %s1013_s25  ;;  %s872_s30 = sshra.s32 %s238_s9, 4  ;;  %s873_s30 = int_to_ptr.hbm [resolvable:$true] %s872_s30 }
  0x40   : > { %s874_s6 = scalar_lea.hbm %s873_s30, 8  ;;  %s879_s8 = scalar_lea.hbm %s1246_s3, 16 }
  0x41   : > { %p875_p13 = scmp.ne.s32.totalorder %s873_s30, %s874_s6  ;;  %p880_p2 = scmp.lt.s32.totalorder %s873_s30, %s1246_s3 }
  0x42   : > { %p881_p3 = scmp.lt.s32.totalorder %s879_s8, %s874_s6 }
  0x43   : > { %p877_p0 = pnand %p875_p13, %p786_p10 }
  0x44   : > { %p882_p4 = por %p881_p3, %p880_p2 }
  0x45   : > { %p878_p1 = pneg %p877_p0 }
  0x47   : > { %p883_p6 = pnand %p882_p4, %p878_p1 }
  0x49   : > { %886 = shalt.err (!%p883_p6)
}
  0x4a   : > { %746 = dma.hbm_to_vmem [thread:$0]  (!%p1015_p8), %s238_s9, 128, %s240_s5, %s227_s22  }
  0x4b   : > { %248 = sbr.rel (%p1050_p5) target bundleno = 440 (0x1b8), region = 36  ;;  %s250_s25 = sand.u32 (!%p1050_p5), 1, %s936_s16  }
  0x4c   : > { %s251_s11 = scalar_lea.sflag (!%p1050_p5), [#allocation3], %s250_s25  ;;  %s253_s28 = scalar_lea.vmem (!%p1050_p5), [#allocation2], %s250_s25 }
  0x50   : > { %919 = dma.done.wait (%p1008_p7), %s251_s11, 16  }
  0x51   : > { %921 = vsyncadd (%p1008_p7), %s251_s11, 4294967280  ;;  %s259_s12 = sand.u32 1, %s991_s19   ;;  %s654_s15 = sshll.u32 %s250_s25, 2 }
  0x52   : > { %s260_s21 = scalar_lea.sflag [#allocation5], %s259_s12  ;;  %s1111_s26 = scalar_lea.vmem [#allocation4], %s654_s15 }
  0x53   : > { %923 = dma.done.wait (%p1008_p7), %s260_s21, 128  }
  0x54   : > { %925 = vsyncadd (%p1008_p7), %s260_s21, 4294967168  ;;  %s656_s27 = sshll.u32 %s250_s25, 3  ;;  %s1117_s29 = scalar_lea.vmem [#allocation6], %s654_s15 }
  0x55   : > { %s280_s10 = scalar_lea.sflag [#allocation8], %s250_s25  ;;  %s283_s5 = scalar_lea.vmem [#allocation7], %s656_s27 }
  0x56   : > { %927 = dma.done.wait (%p1008_p7), %s280_s10, 128  }
  0x57   : > { %929 = vsyncadd (%p1008_p7), %s280_s10, 4294967168  ;;  %v325_v0 = vlaneseq  ;;  %v1130_v7 = vld [vmem:[%s253_s28] ss:$0 sm:$0xff]  ;;  %v946_v12 = vmov 1.0   ;;  %v502_v38 = vld [vmem:[%s1111_s26] sm:$0xf] }
  0x58   : > { %v455_v8 = vld [vmem:[%s283_s5] sm:$0xff]  ;;  %v503_v39 = vld [vmem:[%s1117_s29] sm:$0xf]  ;;  %p321_p7 = scmp.lt.s32.totalorder %s991_s19, 1 }
  0x59   : > { %v1123_v1 = vshrl.u32 %v325_v0, 7  ;;  %457 = vst [vmem:[#allocation1] ss:$2 sm:$0xff] %v455_v8  ;;  %v505_v43 = vmul.f32 %v503_v39, %v502_v38 }
  0x5a   : > { %s1256_s19 = smov (!%p321_p7, %s991_s19), 1 }
  0x5b   : > { %v341_v2 = vadd.s32 120, %v1123_v1  ;;  %v357_v3 = vadd.s32 248, %v1123_v1  ;;  %v340_v4 = vadd.s32 112, %v1123_v1  ;;  %v356_v5 = vadd.s32 240, %v1123_v1  ;;  %s323_s22 = scalar_lea.vmem %s1247_s4, %s1256_s19 }
  0x5c   : > { %v339_v6 = vadd.s32 104, %v1123_v1  ;;  %v355_v9 = vadd.s32 232, %v1123_v1  ;;  %v338_v10 = vadd.s32 96, %v1123_v1  ;;  %v354_v11 = vadd.s32 224, %v1123_v1 }
  0x5d   : > { %vm374_vm0 = vcmp.eq.s32.totalorder %v341_v2, %v1130_v7  ;;  %vm390_vm1 = vcmp.eq.s32.totalorder %v357_v3, %v1130_v7  ;;  %vm373_vm2 = vcmp.eq.s32.totalorder %v340_v4, %v1130_v7  ;;  %vm389_vm3 = vcmp.eq.s32.totalorder %v356_v5, %v1130_v7 }
  0x5e   : > { %689 = vmatpush.msk.msra.mxu0 %vm374_vm0, %v946_v12  ;;  %705 = vmatpush.msk.msra.mxu1 %vm390_vm1, %v946_v12  ;;  %vm372_vm4 = vcmp.eq.s32.totalorder %v339_v6, %v1130_v7  ;;  %vm388_vm5 = vcmp.eq.s32.totalorder %v355_v9, %v1130_v7  ;;  %v337_v13 = vadd.s32 88, %v1123_v1  ;;  %v353_v14 = vadd.s32 216, %v1123_v1 }
  0x5f   : > { %vm371_vm6 = vcmp.eq.s32.totalorder %v338_v10, %v1130_v7  ;;  %vm387_vm7 = vcmp.eq.s32.totalorder %v354_v11, %v1130_v7  ;;  %v336_v15 = vadd.s32 80, %v1123_v1  ;;  %v352_v16 = vadd.s32 208, %v1123_v1 }
  0x60   : > { %690 = vmatpush.msk.msra.mxu0 %vm373_vm2, %v946_v12  ;;  %706 = vmatpush.msk.msra.mxu1 %vm389_vm3, %v946_v12  ;;  %vm370_vm8 = vcmp.eq.s32.totalorder %v337_v13, %v1130_v7  ;;  %vm386_vm9 = vcmp.eq.s32.totalorder %v353_v14, %v1130_v7  ;;  %v335_v17 = vadd.s32 72, %v1123_v1  ;;  %v351_v18 = vadd.s32 200, %v1123_v1  ;;  %v458_v36 = vld.sshfl [vmem:[#allocation1] sm:$0xff pattern:$0x75316420] }
  0x61   : > { %vm369_vm10 = vcmp.eq.s32.totalorder %v336_v15, %v1130_v7  ;;  %vm385_vm11 = vcmp.eq.s32.totalorder %v352_v16, %v1130_v7  ;;  %v334_v19 = vadd.s32 64, %v1123_v1  ;;  %v350_v20 = vadd.s32 192, %v1123_v1  ;;  %v459_v37 = vld.sshfl [vmem:[#allocation1 + $0x8] sm:$0xff pattern:$0x75316420] }
  0x62   : > { %691 = vmatpush.msk.msra.mxu0 %vm372_vm4, %v946_v12  ;;  %707 = vmatpush.msk.msra.mxu1 %vm388_vm5, %v946_v12  ;;  %vm368_vm12 = vcmp.eq.s32.totalorder %v335_v17, %v1130_v7  ;;  %vm384_vm13 = vcmp.eq.s32.totalorder %v351_v18, %v1130_v7  ;;  %v333_v21 = vadd.s32 56, %v1123_v1  ;;  %v349_v22 = vadd.s32 184, %v1123_v1 }
  0x63   : > { %vm367_vm14 = vcmp.eq.s32.totalorder %v334_v19, %v1130_v7  ;;  %vm383_vm15 = vcmp.eq.s32.totalorder %v350_v20, %v1130_v7  ;;  %v332_v23 = vadd.s32 48, %v1123_v1  ;;  %v348_v24 = vadd.s32 176, %v1123_v1 }
  0x64   : > { %692 = vmatpush.msk.msra.mxu0 %vm371_vm6, %v946_v12  ;;  %708 = vmatpush.msk.msra.mxu1 %vm387_vm7, %v946_v12  ;;  %vm366_vm0 = vcmp.eq.s32.totalorder %v333_v21, %v1130_v7  ;;  %vm382_vm1 = vcmp.eq.s32.totalorder %v349_v22, %v1130_v7  ;;  %v331_v25 = vadd.s32 40, %v1123_v1  ;;  %v347_v26 = vadd.s32 168, %v1123_v1 }
  0x65   : > { %vm365_vm2 = vcmp.eq.s32.totalorder %v332_v23, %v1130_v7  ;;  %vm381_vm3 = vcmp.eq.s32.totalorder %v348_v24, %v1130_v7  ;;  %v330_v27 = vadd.s32 32, %v1123_v1  ;;  %v346_v28 = vadd.s32 160, %v1123_v1 }
  0x66   : > { %693 = vmatpush.msk.msra.mxu0 %vm370_vm8, %v946_v12  ;;  %709 = vmatpush.msk.msra.mxu1 %vm386_vm9, %v946_v12  ;;  %vm364_vm4 = vcmp.eq.s32.totalorder %v331_v25, %v1130_v7  ;;  %vm380_vm5 = vcmp.eq.s32.totalorder %v347_v26, %v1130_v7  ;;  %v329_v29 = vadd.s32 24, %v1123_v1  ;;  %v345_v30 = vadd.s32 152, %v1123_v1 }
  0x67   : > { %vm363_vm6 = vcmp.eq.s32.totalorder %v330_v27, %v1130_v7  ;;  %vm379_vm7 = vcmp.eq.s32.totalorder %v346_v28, %v1130_v7  ;;  %v328_v31 = vadd.s32 16, %v1123_v1  ;;  %v344_v32 = vadd.s32 144, %v1123_v1 }
  0x68   : > { %694 = vmatpush.msk.msra.mxu0 %vm369_vm10, %v946_v12  ;;  %710 = vmatpush.msk.msra.mxu1 %vm385_vm11, %v946_v12  ;;  %vm362_vm8 = vcmp.eq.s32.totalorder %v329_v29, %v1130_v7  ;;  %vm378_vm9 = vcmp.eq.s32.totalorder %v345_v30, %v1130_v7  ;;  %v327_v33 = vadd.s32 8, %v1123_v1  ;;  %v343_v34 = vadd.s32 136, %v1123_v1 }
  0x69   : > { %vm361_vm10 = vcmp.eq.s32.totalorder %v328_v31, %v1130_v7  ;;  %vm377_vm11 = vcmp.eq.s32.totalorder %v344_v32, %v1130_v7  ;;  %v342_v35 = vadd.s32 128, %v1123_v1 }
  0x6a   : > { %695 = vmatpush.msk.msra.mxu0 %vm368_vm12, %v946_v12  ;;  %711 = vmatpush.msk.msra.mxu1 %vm384_vm13, %v946_v12  ;;  %vm360_vm12 = vcmp.eq.s32.totalorder %v327_v33, %v1130_v7  ;;  %vm376_vm13 = vcmp.eq.s32.totalorder %v343_v34, %v1130_v7 }
  0x6c   : > { %696 = vmatpush.msk.msra.mxu0 %vm367_vm14, %v946_v12  ;;  %712 = vmatpush.msk.msra.mxu1 %vm383_vm15, %v946_v12  ;;  %vm359_vm14 = vcmp.eq.s32.totalorder %v1123_v1, %v1130_v7  ;;  %vm375_vm15 = vcmp.eq.s32.totalorder %v342_v35, %v1130_v7 }
  0x6e   : > { %697 = vmatpush.msk.msra.mxu0 %vm366_vm0, %v946_v12  ;;  %713 = vmatpush.msk.msra.mxu1 %vm382_vm1, %v946_v12  ;;  %vm508_vm0 = vcmask 60416   ;;  %vm520_vm1 = vcmask 0  }
  0x70   : > { %698 = vmatpush.msk.msra.mxu0 %vm365_vm2, %v946_v12  ;;  %714 = vmatpush.msk.msra.mxu1 %vm381_vm3, %v946_v12 }
  0x72   : > { %699 = vmatpush.msk.msra.mxu0 %vm364_vm4, %v946_v12  ;;  %715 = vmatpush.msk.msra.mxu1 %vm380_vm5, %v946_v12 }
  0x74   : > { %700 = vmatpush.msk.msra.mxu0 %vm363_vm6, %v946_v12  ;;  %716 = vmatpush.msk.msra.mxu1 %vm379_vm7, %v946_v12 }
  0x76   : > { %701 = vmatpush.msk.msra.mxu0 %vm362_vm8, %v946_v12  ;;  %717 = vmatpush.msk.msra.mxu1 %vm378_vm9, %v946_v12 }
  0x78   : > { %702 = vmatpush.msk.msra.mxu0 %vm361_vm10, %v946_v12  ;;  %718 = vmatpush.msk.msra.mxu1 %vm377_vm11, %v946_v12 }
  0x7a   : > { %703 = vmatpush.msk.msra.mxu0 %vm360_vm12, %v946_v12  ;;  %719 = vmatpush.msk.msra.mxu1 %vm376_vm13, %v946_v12 }
  0x7c   : > { %704 = vmatpush.msk.msra.mxu0 %vm359_vm14, %v946_v12  ;;  %720 = vmatpush.msk.msra.mxu1 %vm375_vm15, %v946_v12 }
  0x7d   : > { %478 = vmatmul.f32.vlgmr.msra.gmra.mxu0 %v458_v36  ;;  %498 = vmatmul.f32.vlgmr.msra.gmra.mxu1 %v459_v37 }
  0xfa   : > { %v479_v40 = vpop.f32.mrf.mxu0  ;;  %v499_v41 = vpop.f32.mrf.mxu1 }
  0xfb   : > { %v500_v42 = vadd.f32 %v499_v41, %v479_v40 }
  0xfd   : > { %v504_v44 = vmul.f32 %v502_v38, %v500_v42 }
  0xff   : > { %v506_v45 = vsub.f32 %v504_v44, %v505_v43 }
 0x101   : > { %v507_v46 = vand.u32 2147483647, %v506_v45 }
 0x103   : > { %v509_v47 = vsel %vm508_vm0, %v507_v46, 0.0 }
 0x104   : > { %510 = vadd.xlane.f32.xlu0 %v509_v47 }
 0x177   : > { %v511_v48 = vpop.xlane.xlu0 %510 }
 0x178   : > { %v512_v49 = vrot.slane %v511_v48, 4 }
 0x17a   : > { %v513_v50 = vadd.f32 %v512_v49, %v511_v48 }
 0x17c   : > { %v514_v51 = vrot.slane %v513_v50, 2 }
 0x17e   : > { %v515_v52 = vadd.f32 %v514_v51, %v513_v50 }
 0x180   : > { %v516_v53 = vrot.slane %v515_v52, 1 }
 0x182   : > { %v517_v54 = vadd.f32 %v516_v53, %v515_v52 }
 0x184   : > { %724 = vpush %v517_v54 }
 0x1b5   : > { %s725_s30 = spop %724 }
 0x1b6   : > { %v519_v55 = vstv %s725_s30 }
 0x1b7   : > { %521 = vst.msk [vmem:[%s323_s22] sm:$0x1] %vm520_vm1, %v519_v55 }
 0x1b8 PF: > { %p20_p8 = scmp.ge.s32.totalorder %s994_s20, 4   ;;  %s1251_s15 = smov %s936_s16 }
 0x1b9   : > { %s1252_s16 = smov %s940_s17  ;;  %s1253_s17 = smov %s1004_s23 }
 0x1ba   : > { %s1254_s18 = smov %s994_s20  ;;  %22 = sbr.rel (!%p20_p8) target bundleno = 7 (0x7), region = 113 }
 0x1bf   :  { %539 = vsyncpa [#allocation3], 1 }
 0x1c0   :  { %541 = vsyncpa [#allocation3 + $0x1], 1 }
 0x1c1   :  { %542 = vsyncpa [#allocation5], 1 }
 0x1c2   :  { %544 = vsyncpa [#allocation5 + $0x1], 1 }
 0x1c3   :  { %545 = vsyncpa [#allocation8], 1 }
 0x1c4   :  { %547 = vsyncpa [#allocation8 + $0x1], 1 }

</bundles_post_ra>
